<compile_context>
chip_gen: v7x
topology: tpu7x:2x2x1
jax: 0.10.0
libtpu: 0.0.40
codegen_flags: <defaults>
</compile_context>

<pallas_src>
import functools
import math

import jax
import jax.numpy as jnp
from jax import lax
from jax.experimental import pallas as pl
from jax.experimental.pallas import tpu as pltpu


# ---------------------------------------------------------------------------
# Fused GEMM kernel:  out = maybe_relu((x @ w) * scale + bias [+ residual])
# Used as implicit-GEMM convolution (im2col done in the wrapper) and for the
# final fully-connected layer.
# ---------------------------------------------------------------------------
def _gemm_bn_act_kernel(x_ref, w_ref, s_ref, b_ref, *rest,
                        apply_relu, has_residual):
    if has_residual:
        r_ref, o_ref, acc_ref = rest
    else:
        o_ref, acc_ref = rest

    @pl.when(pl.program_id(2) == 0)
    def _():
        acc_ref[...] = jnp.zeros_like(acc_ref)

    acc_ref[...] += jnp.dot(x_ref[...], w_ref[...],
                            preferred_element_type=jnp.float32)

    @pl.when(pl.program_id(2) == pl.num_programs(2) - 1)
    def _():
        y = acc_ref[...] * s_ref[...] + b_ref[...]       # fused BN epilogue
        if has_residual:
            y = y + r_ref[...]                           # fused residual add
        if apply_relu:
            y = jnp.maximum(y, 0.0)                      # fused ReLU
        o_ref[...] = y.astype(o_ref.dtype)


def _round_up(x, m):
    return ((x + m - 1) // m) * m


def _vmem_limit_bytes():
    # Derive the scoped-VMEM request from the actual chip generation
    # (v5e/v6e: 128 MiB physical -> 64 MiB request; v7x: 64 MiB -> 32 MiB).
    try:
        cap = int(pltpu.get_tpu_info().vmem_capacity_bytes)
    except Exception:
        cap = 64 * 1024 * 1024
    return int(min(max(cap // 2, 16 * 1024 * 1024), 64 * 1024 * 1024))


def fused_matmul(x, w, scale, bias, *, apply_relu, residual=None):
    """maybe_relu((x @ w) * scale + bias [+ residual]); scale/bias are per-column."""
    m, k = x.shape
    k2, n = w.shape
    assert k2 == k
    # Pad to (8,128)-aligned shapes so every block is fully tile-aligned and
    # the tile sizes below divide the padded dims exactly.
    mp = _round_up(m, 8)
    kp = _round_up(k, 128)
    np_ = _round_up(n, 128)
    tm = math.gcd(mp, 256)      # multiple of 8,   divides mp
    tk = math.gcd(kp, 512)      # multiple of 128, divides kp
    tn = math.gcd(np_, 256)     # multiple of 128, divides np_

    xp = jnp.pad(x.astype(jnp.float32), ((0, mp - m), (0, kp - k)))
    wp = jnp.pad(w.astype(jnp.float32), ((0, kp - k), (0, np_ - n)))
    sp = jnp.pad(scale.astype(jnp.float32), (0, np_ - n),
                 constant_values=1.0).reshape(1, np_)
    bp = jnp.pad(bias.astype(jnp.float32), (0, np_ - n)).reshape(1, np_)

    args = [xp, wp, sp, bp]
    in_specs = [
        pl.BlockSpec((tm, tk), lambda i, j, kk: (i, kk)),
        pl.BlockSpec((tk, tn), lambda i, j, kk: (kk, j)),
        pl.BlockSpec((1, tn), lambda i, j, kk: (0, j)),
        pl.BlockSpec((1, tn), lambda i, j, kk: (0, j)),
    ]
    bytes_accessed = 4 * (mp * kp + kp * np_ + mp * np_ + 2 * np_)
    has_residual = residual is not None
    if has_residual:
        rp = jnp.pad(residual.astype(jnp.float32), ((0, mp - m), (0, np_ - n)))
        args.append(rp)
        # Same block index across k -> fetched once per (i, j), not per k-step.
        in_specs.append(pl.BlockSpec((tm, tn), lambda i, j, kk: (i, j)))
        bytes_accessed += 4 * mp * np_

    grid = (mp // tm, np_ // tn, kp // tk)

    out = pl.pallas_call(
        functools.partial(_gemm_bn_act_kernel,
                          apply_relu=apply_relu, has_residual=has_residual),
        out_shape=jax.ShapeDtypeStruct((mp, np_), jnp.float32),
        grid=grid,
        in_specs=in_specs,
        out_specs=pl.BlockSpec((tm, tn), lambda i, j, kk: (i, j)),
        scratch_shapes=[pltpu.VMEM((tm, tn), jnp.float32)],
        compiler_params=pltpu.CompilerParams(
            dimension_semantics=("parallel", "parallel", "arbitrary"),
            vmem_limit_bytes=_vmem_limit_bytes(),
        ),
        cost_estimate=pl.CostEstimate(
            flops=2 * mp * kp * np_, transcendentals=0,
            bytes_accessed=bytes_accessed),
    )(*args)
    return out[:m, :n]


# ---------------------------------------------------------------------------
# Convolution = im2col (layout plumbing in the wrapper) + fused GEMM kernel.
# ---------------------------------------------------------------------------
def _im2col(x, kh, kw, stride, padding):
    n, c, h, w = x.shape
    xp = jnp.pad(x, ((0, 0), (0, 0), (padding, padding), (padding, padding)))
    ho = (h + 2 * padding - kh) // stride + 1
    wo = (w + 2 * padding - kw) // stride + 1
    cols = []
    for i in range(kh):
        for j in range(kw):
            cols.append(lax.slice(
                xp, (0, 0, i, j),
                (n, c, i + (ho - 1) * stride + 1, j + (wo - 1) * stride + 1),
                (1, 1, stride, stride)))            # (n, c, ho, wo)
    col = jnp.stack(cols, axis=2)                   # (n, c, kh*kw, ho, wo)
    col = col.transpose(0, 3, 4, 1, 2)              # (n, ho, wo, c, kh*kw)
    return col.reshape(n * ho * wo, c * kh * kw), ho, wo


def conv_bn_act(x, weight, scale, bias, *, stride, padding, apply_relu,
                residual=None):
    n, c_in, h, w = x.shape
    c_out, c_in2, kh, kw = weight.shape
    assert c_in2 == c_in
    col, ho, wo = _im2col(x, kh, kw, stride, padding)
    w_mat = weight.reshape(c_out, c_in * kh * kw).T        # (K, c_out)
    res_mat = None
    if residual is not None:
        res_mat = residual.transpose(0, 2, 3, 1).reshape(n * ho * wo, c_out)
    y = fused_matmul(col, w_mat, scale, bias,
                     apply_relu=apply_relu, residual=res_mat)
    return y.reshape(n, ho, wo, c_out).transpose(0, 3, 1, 2)


# ---------------------------------------------------------------------------
# Fused bn_final + ReLU + global average pool kernel.
# ---------------------------------------------------------------------------
def _bn_relu_pool_kernel(x_ref, s_ref, b_ref, o_ref):
    y = jnp.maximum(x_ref[...] * s_ref[...] + b_ref[...], 0.0)
    o_ref[...] = jnp.mean(y, axis=-1, keepdims=True)


def bn_relu_global_pool(x, scale, bias):
    n, c, h, w = x.shape
    x2 = x.reshape(n * c, h * w)
    s2 = jnp.tile(scale.astype(jnp.float32), (n,)).reshape(n * c, 1)
    b2 = jnp.tile(bias.astype(jnp.float32), (n,)).reshape(n * c, 1)
    out = pl.pallas_call(
        _bn_relu_pool_kernel,
        out_shape=jax.ShapeDtypeStruct((n * c, 1), jnp.float32),
    )(x2.astype(jnp.float32), s2, b2)
    return out.reshape(n, c)


# ---------------------------------------------------------------------------
# Parameters (He init for convs, TF-style BN settings: eps=0.001).
# ---------------------------------------------------------------------------
def _he_conv(key, c_out, c_in, kh, kw):
    fan = kh * kw * c_out
    return jax.random.normal(key, (c_out, c_in, kh, kw), jnp.float32) \
        * math.sqrt(2.0 / fan)


def _bn_params(key, c):
    k1, k2, k3, k4 = jax.random.split(key, 4)
    return dict(
        gamma=jax.random.uniform(k1, (c,), jnp.float32, 0.5, 1.5),
        beta=0.1 * jax.random.normal(k2, (c,), jnp.float32),
        mean=0.1 * jax.random.normal(k3, (c,), jnp.float32),
        var=jax.random.uniform(k4, (c,), jnp.float32, 0.5, 1.5),
        eps=0.001,
    )


def _fold_bn(bn):
    scale = bn['gamma'] / jnp.sqrt(bn['var'] + bn['eps'])
    bias = bn['beta'] - bn['mean'] * scale
    return scale, bias


def init_resnet(key, layers, channels_per_layer, strides, num_classes,
                init_kernel_size=3):
    assert len(channels_per_layer) == len(layers) + 1
    keys = iter(jax.random.split(key, 128))
    params = {}
    inplanes = channels_per_layer[0]
    params['conv1'] = _he_conv(next(keys), inplanes, 3,
                               init_kernel_size, init_kernel_size)
    params['bn1'] = _bn_params(next(keys), inplanes)
    params['init_conv_stride'] = strides[0]
    params['init_kernel_size'] = init_kernel_size
    params['layers'] = []
    for li, nblocks in enumerate(layers):
        planes = channels_per_layer[li + 1]
        stride = strides[li + 1]
        blocks = []
        for bi in range(nblocks):
            s = stride if bi == 0 else 1
            blk = {'stride': s,
                   'conv1': _he_conv(next(keys), planes, inplanes, 3, 3),
                   'bn1': _bn_params(next(keys), planes),
                   'conv2': _he_conv(next(keys), planes, planes, 3, 3),
                   'bn2': _bn_params(next(keys), planes)}
            if s != 1 or inplanes != planes:
                blk['down_conv'] = _he_conv(next(keys), planes, inplanes, 1, 1)
                blk['down_bn'] = _bn_params(next(keys), planes)
            blocks.append(blk)
            inplanes = planes
        params['layers'].append(blocks)
    params['bn_final'] = _bn_params(next(keys), inplanes)
    bound = 1.0 / math.sqrt(inplanes)
    kw_, kb_ = jax.random.split(next(keys))
    params['fc_w'] = jax.random.uniform(kw_, (inplanes, num_classes),
                                        jnp.float32, -bound, bound)
    params['fc_b'] = jax.random.uniform(kb_, (num_classes,),
                                        jnp.float32, -bound, bound)
    return params


# ---------------------------------------------------------------------------
# Forward pass (Pallas) and pure-JAX reference.
# ---------------------------------------------------------------------------
def basic_block_forward(blk, x):
    if 'down_conv' in blk:
        sd, bd = _fold_bn(blk['down_bn'])
        identity = conv_bn_act(x, blk['down_conv'], sd, bd,
                               stride=blk['stride'], padding=0,
                               apply_relu=False)
    else:
        identity = x
    s1, b1 = _fold_bn(blk['bn1'])
    out = conv_bn_act(x, blk['conv1'], s1, b1, stride=blk['stride'],
                      padding=1, apply_relu=True)
    s2, b2 = _fold_bn(blk['bn2'])
    # residual add + ReLU fused into the second conv's GEMM epilogue
    out = conv_bn_act(out, blk['conv2'], s2, b2, stride=1, padding=1,
                      apply_relu=True, residual=identity)
    return out


def resnet_forward(params, x):
    ks = params['init_kernel_size']
    s1, b1 = _fold_bn(params['bn1'])
    x = conv_bn_act(x, params['conv1'], s1, b1,
                    stride=params['init_conv_stride'],
                    padding=(ks - 1) // 2, apply_relu=True)
    for blocks in params['layers']:
        for blk in blocks:
            x = basic_block_forward(blk, x)
    sf, bf = _fold_bn(params['bn_final'])
    x = bn_relu_global_pool(x, sf, bf)                         # (N, C)
    ones = jnp.ones((params['fc_w'].shape[1],), jnp.float32)
    return fused_matmul(x, params['fc_w'], ones, params['fc_b'],
                        apply_relu=False)


def _conv_ref(x, w, stride, padding):
    return lax.conv_general_dilated(
        x, w, window_strides=(stride, stride),
        padding=[(padding, padding), (padding, padding)],
        dimension_numbers=('NCHW', 'OIHW', 'NCHW'))


def _bn_ref(x, bn):
    s, b = _fold_bn(bn)
    return x * s[None, :, None, None] + b[None, :, None, None]


def resnet_forward_ref(params, x):
    ks = params['init_kernel_size']
    x = _conv_ref(x, params['conv1'], params['init_conv_stride'], (ks - 1) // 2)
    x = jnp.maximum(_bn_ref(x, params['bn1']), 0.0)
    for blocks in params['layers']:
        for blk in blocks:
            if 'down_conv' in blk:
                identity = _bn_ref(
                    _conv_ref(x, blk['down_conv'], blk['stride'], 0),
                    blk['down_bn'])
            else:
                identity = x
            out = jnp.maximum(
                _bn_ref(_conv_ref(x, blk['conv1'], blk['stride'], 1),
                        blk['bn1']), 0.0)
            out = _bn_ref(_conv_ref(out, blk['conv2'], 1, 1), blk['bn2'])
            x = jnp.maximum(out + identity, 0.0)
    x = jnp.maximum(_bn_ref(x, params['bn_final']), 0.0)
    x = jnp.mean(x, axis=(2, 3))
    return x @ params['fc_w'] + params['fc_b']


if __name__ == "__main__":
    key = jax.random.PRNGKey(0)
    k_params, k_x = jax.random.split(key)

    # Small config consistent with the module's constructor knobs.
    layers = [1, 1, 1]
    channels_per_layer = [8, 8, 16, 32]
    strides = [1, 2, 2, 2]
    params = init_resnet(k_params, layers, channels_per_layer, strides,
                         num_classes=10, init_kernel_size=3)
    x = jax.random.normal(k_x, (2, 3, 32, 32), dtype=jnp.float32)

    out = jax.block_until_ready(resnet_forward(params, x))
    ref = jax.block_until_ready(resnet_forward_ref(params, x))

    assert out.shape == ref.shape == (2, 10)
    assert bool(jnp.all(jnp.isfinite(out)))
    max_err = float(jnp.max(jnp.abs(out - ref)))
    tol = 5e-2 * max(1.0, float(jnp.max(jnp.abs(ref))))
    assert max_err < tol, f"mismatch: max_err={max_err}, tol={tol}"

    print("KERNEL_OK")
</pallas_src>

<mosaic_0001>
module attributes {stable_mosaic.version = 11 : i64} {
  func.func @_gemm_bn_act_kernel(%arg0: i32, %arg1: i32, %arg2: i32, %arg3: memref<256x128xf32, #tpu.memory_space<vmem>>, %arg4: memref<128x128xf32, #tpu.memory_space<vmem>>, %arg5: memref<1x128xf32, #tpu.memory_space<vmem>>, %arg6: memref<1x128xf32, #tpu.memory_space<vmem>>, %arg7: memref<256x128xf32, #tpu.memory_space<vmem>>, %arg8: memref<256x128xf32, #tpu.memory_space<vmem>>) attributes {dimension_semantics = [#tpu.dimension_semantics<parallel>, #tpu.dimension_semantics<parallel>, #tpu.dimension_semantics<arbitrary>], iteration_bounds = array<i64: 8, 1, 1>, scalar_prefetch = 0 : i64, scratch_operands = 1 : i64, tpu.core_type = #tpu.core_type<tc>, window_params = [{transform_indices = @transform_0, window_bounds = array<i64: 256, 128>}, {transform_indices = @transform_1, window_bounds = array<i64: 128, 128>}, {transform_indices = @transform_2, window_bounds = array<i64: 1, 128>}, {transform_indices = @transform_3, window_bounds = array<i64: 1, 128>}, {transform_indices = @transform_4, window_bounds = array<i64: 256, 128>}]} {
    %c0_i32 = arith.constant 0 : i32
    %0 = arith.cmpi eq, %arg2, %c0_i32 : i32
    %1 = arith.extui %0 : i1 to i32
    %c0_i32_0 = arith.constant 0 : i32
    %2 = arith.cmpi ne, %1, %c0_i32_0 : i32
    scf.if %2 {
      %cst_10 = arith.constant 0.000000e+00 : f32
      %12 = vector.broadcast %cst_10 : f32 to vector<256x128xf32>
      %c0_11 = arith.constant 0 : index
      %c0_12 = arith.constant 0 : index
      %13 = vector.load %arg8[%c0_11, %c0_12] : memref<256x128xf32, #tpu.memory_space<vmem>>, vector<256x128xf32>
      tpu.vector_store %arg8[%c0_11, %c0_12], %12 {strides = array<i32>} : memref<256x128xf32, #tpu.memory_space<vmem>>, vector<256x128xf32>,
    } else {
    }
    %c0 = arith.constant 0 : index
    %c0_1 = arith.constant 0 : index
    %3 = vector.load %arg8[%c0, %c0_1] : memref<256x128xf32, #tpu.memory_space<vmem>>, vector<256x128xf32>
    %c0_2 = arith.constant 0 : index
    %c0_3 = arith.constant 0 : index
    %4 = vector.load %arg3[%c0_2, %c0_3] : memref<256x128xf32, #tpu.memory_space<vmem>>, vector<256x128xf32>
    %c0_4 = arith.constant 0 : index
    %c0_5 = arith.constant 0 : index
    %5 = vector.load %arg4[%c0_4, %c0_5] : memref<128x128xf32, #tpu.memory_space<vmem>>, vector<128x128xf32>
    %cst = arith.constant dense<0.000000e+00> : vector<256x128xf32>
    %6 = tpu.matmul %4, %5, %cst {dimension_numbers = #tpu.dot_dimension_numbers<[1], [0], [0], [1], [0, 0, 1, 1], [], []>} : vector<256x128xf32>, vector<128x128xf32>, vector<256x128xf32> -> vector<256x128xf32>
    %7 = arith.addf %3, %6 : vector<256x128xf32>
    %c0_6 = arith.constant 0 : index
    %c0_7 = arith.constant 0 : index
    %8 = vector.load %arg8[%c0_6, %c0_7] : memref<256x128xf32, #tpu.memory_space<vmem>>, vector<256x128xf32>
    tpu.vector_store %arg8[%c0_6, %c0_7], %7 {strides = array<i32>} : memref<256x128xf32, #tpu.memory_space<vmem>>, vector<256x128xf32>,
    %c0_i32_8 = arith.constant 0 : i32
    %9 = arith.cmpi eq, %arg2, %c0_i32_8 : i32
    %10 = arith.extui %9 : i1 to i32
    %c0_i32_9 = arith.constant 0 : i32
    %11 = arith.cmpi ne, %10, %c0_i32_9 : i32
    scf.if %11 {
      %c0_10 = arith.constant 0 : index
      %c0_11 = arith.constant 0 : index
      %12 = vector.load %arg8[%c0_10, %c0_11] : memref<256x128xf32, #tpu.memory_space<vmem>>, vector<256x128xf32>
      %c0_12 = arith.constant 0 : index
      %c0_13 = arith.constant 0 : index
      %13 = vector.load %arg5[%c0_12, %c0_13] : memref<1x128xf32, #tpu.memory_space<vmem>>, vector<1x128xf32>
      %14 = vector.broadcast %13 : vector<1x128xf32> to vector<256x128xf32>
      %15 = arith.mulf %12, %14 : vector<256x128xf32>
      %c0_14 = arith.constant 0 : index
      %c0_15 = arith.constant 0 : index
      %16 = vector.load %arg6[%c0_14, %c0_15] : memref<1x128xf32, #tpu.memory_space<vmem>>, vector<1x128xf32>
      %17 = vector.broadcast %16 : vector<1x128xf32> to vector<256x128xf32>
      %18 = arith.addf %15, %17 : vector<256x128xf32>
      %cst_16 = arith.constant 0.000000e+00 : f32
      %19 = vector.broadcast %cst_16 : f32 to vector<256x128xf32>
      %20 = arith.maximumf %18, %19 : vector<256x128xf32>
      %c0_17 = arith.constant 0 : index
      %c0_18 = arith.constant 0 : index
      %21 = vector.load %arg7[%c0_17, %c0_18] : memref<256x128xf32, #tpu.memory_space<vmem>>, vector<256x128xf32>
      tpu.vector_store %arg7[%c0_17, %c0_18], %20 {strides = array<i32>} : memref<256x128xf32, #tpu.memory_space<vmem>>, vector<256x128xf32>,
    } else {
    }
    return
  }
  func.func @transform_0(%arg0: i32, %arg1: i32, %arg2: i32) -> (i32, i32) {
    %c0_i32 = arith.constant 0 : i32
    return %arg0, %arg2 : i32, i32
  }
  func.func @transform_1(%arg0: i32, %arg1: i32, %arg2: i32) -> (i32, i32) {
    %c0_i32 = arith.constant 0 : i32
    return %arg2, %arg1 : i32, i32
  }
  func.func @transform_2(%arg0: i32, %arg1: i32, %arg2: i32) -> (i32, i32) {
    %c0_i32 = arith.constant 0 : i32
    %c0_i32_0 = arith.constant 0 : i32
    return %c0_i32, %arg1 : i32, i32
  }
  func.func @transform_3(%arg0: i32, %arg1: i32, %arg2: i32) -> (i32, i32) {
    %c0_i32 = arith.constant 0 : i32
    %c0_i32_0 = arith.constant 0 : i32
    return %c0_i32, %arg1 : i32, i32
  }
  func.func @transform_4(%arg0: i32, %arg1: i32, %arg2: i32) -> (i32, i32) {
    %c0_i32 = arith.constant 0 : i32
    return %arg0, %arg1 : i32, i32
  }
}

</mosaic_0001>

<bundles_post_ra>
// kernel: tpu_custom_call.1
= control target key start
LH: loop header
LB: loop body
LE: loop exit
PB: predicated region body
PF: predicated region fallthrough
CT: control target
= control target key end

     0   :  { %9 = vsyncpa [#allocation4], 0  ;;  %s1844_s0 = inlined_call_operand.hbm [shape: f32[2048,128], index: 0, kind: input, shape index: {}]   ;;  %s1845_s1 = inlined_call_operand.hbm [shape: f32[128,128], index: 1, kind: input, shape index: {}]   ;;  %s1846_s2 = inlined_call_operand.vmem [shape: f32[1,128], index: 2, kind: input, shape index: {}]   ;;  %s1847_s3 = inlined_call_operand.vmem [shape: f32[1,128], index: 3, kind: input, shape index: {}]   ;;  %s1848_s4 = inlined_call_operand.hbm [shape: f32[2048,128], index: 4, kind: output, shape index: {}]  }
   0x1   :  { %11 = vsyncpa [#allocation4 + $0x1], 0 }
   0x2   :  { %12 = vsyncpa [#allocation7], 0 }
   0x3   :  { %13 = vsyncpa [#allocation5], 0 }
   0x4   :  { %15 = vsyncpa [#allocation5 + $0x1], 0  ;;  %s1474_s15 = smov 0   ;;  %s1476_s16 = smov 0  }
   0x5   :  { %s1478_s17 = smov 0   ;;  %s1480_s18 = smov 0  }
   0x6   :  { %s1482_s19 = smov 0   ;;  %s1484_s20 = smov 0  }
   0x7 LB: > { %s1020_s21 = sadd.s32 4294967295, %s1440_s20   ;;  %s1021_s22 = sadd.s32 4294967294, %s1440_s20   ;;  %s1440_s20 = sphi %s1484_s20, %s21_s20   ;;  %s1436_s19 = sphi %s1482_s19, %s1871_s19   ;;  %s1432_s18 = sphi %s1480_s18, %s1870_s18   ;;  %s1428_s17 = sphi %s1478_s17, %s1869_s17   ;;  %s1424_s16 = sphi %s1476_s16, %s1868_s16   ;;  %s1420_s15 = sphi %s1474_s15, %s1867_s15  }
   0x8   : > { %p62_p0 = scmp.ne.s32.totalorder %s1424_s16, %s1420_s15  ;;  %p1508_p1 = scmp.eq.s32.totalorder %s1020_s21, 0 }
   0x9   : > { %p1512_p2 = scmp.eq.s32.totalorder %s1020_s21, 7  ;;  %p174_p3 = scmp.eq.s32.totalorder %s1021_s22, 7 }
   0xa   : > { %s1853_s23 = scalar_select %p1508_p1, 1, 0 }
   0xb   : > { %s1854_s24 = scalar_select %p1512_p2, 1, 0 }
   0xc   : > { %p1518_p4 = por %p1508_p1, %p62_p0  ;;  %p1022_p5 = scmp.ge.s32.totalorder %s1440_s20, 1 }
   0xd   : > { %p1523_p6 = por %p174_p3, %p62_p0  ;;  %p181_p7 = scmp.lt.s32.totalorder %s1440_s20, 9 }
   0xe   : > { %s1855_s25 = scalar_select %p1518_p4, 1, 0 }
   0xf   : > { %s1856_s26 = scalar_select %p1523_p6, 1, 0 }
  0x10   : > { %p1528_p8 = pnand %p1022_p5, %p181_p7  ;;  %s1442_s28 = smov [#allocation6]  }
  0x11   : > { %s197_s29 = sshll.u32 %s1442_s28, 4  ;;  %s40_s5 = sadd.s32 1, %s1436_s19  ;;  %s198_s29 = int_to_ptr.vmem [resolvable:$true] %s197_s29 }
  0x12   : > { %s1857_s27 = scalar_select %p1528_p8, 1, 0 }
  0x13   : > { %p1227_p9 = pneg %p1528_p8  ;;  %s1296_s8 = scalar_lea.hbm %s1845_s1, 2048 }
  0x14   : > { %p1297_p11 = scmp.ne.s32.totalorder %s1845_s1, %s1296_s8  ;;  %p1303_p3 = scmp.lt.u32.totalorder %s1296_s8, %s1845_s1 }
  0x15   : > { %p1536_p10 = pnand %p1227_p9, %p1508_p1 }
  0x17   : > { %p1298_p12 = pneg %p1536_p10 }
  0x19   : > { %p1299_p13 = pnand %p1298_p12, %p1297_p11 }
  0x1b   : > { %p1300_p0 = pneg %p1299_p13 }
  0x1d   : > { %p1305_p5 = pnand %p1303_p3, %p1300_p0 }
  0x1f   : > { %1308 = shalt.err (!%p1305_p5)
}
  0x20   : > { %s1309_s13 = scalar_lea.vmem %s198_s29, 2048  ;;  %p1317_p1 = scmp.lt.s32.totalorder %s198_s29, %s198_s29 }
  0x21   : > { %p1310_p7 = scmp.ne.s32.totalorder %s198_s29, %s1309_s13  ;;  %p1318_p4 = scmp.lt.s32.totalorder %s1309_s13, %s1309_s13 }
  0x23   : > { %p1312_p9 = pnand %p1310_p7, %p1298_p12  ;;  %p1319_p8 = por %p1318_p4, %p1317_p1 }
  0x25   : > { %p1313_p6 = pneg %p1312_p9 }
  0x27   : > { %p1320_p2 = pnand %p1319_p8, %p1313_p6 }
  0x29   : > { %1323 = shalt.err (!%p1320_p2)
}
  0x2a   : > { %s1443_s14 = smov 128   ;;  %s1444_s21 = smov 8  }
  0x2b   : > { %1230 = dma.hbm_to_vmem [thread:$0]  (!%p1536_p10), %s1845_s1, 2048, %s198_s29, [#allocation7], %s1443_s14, %s1443_s14, %s1444_s21  }
  0x2c   : > { %p42_p1 = scmp.ge.s32.totalorder %s40_s5, 8  ;;  %s49_s6 = sadd.s32 1, %s1428_s17 }
  0x2d   : > { %p56_p2 = scmp.ne.s32.totalorder %s1428_s17, %s1424_s16  ;;  %p57_p4 = scmp.eq.s32.totalorder %s1440_s20, 0 }
  0x2e   : > { %s1873_s5 = smov (%p42_p1, %s40_s5), 0  ;;  %p1860_p8 = scmp.ne.s32.totalorder %s1854_s24, 0 }
  0x2f   : > { %p1566_p6 = por %p57_p4, %p56_p2  ;;  %s44_s8 = ssub.s32 %s1436_s19, %s1873_s5 }
  0x30   : > { %p1572_p11 = por %p1860_p8, %p56_p2  ;;  %p1240_p12 = scmp.lt.s32.totalorder %s1440_s20, 8 }
  0x31   : > { %p47_p10 = scmp.eq.s32.totalorder %s44_s8, 0  ;;  %s223_s29 = sand.u32 1, %s1428_s17  }
  0x32   : > { %s1027_s9 = sshll.u32 %s223_s29, 8  ;;  %s1041_s11 = sshll.u32 %s1436_s19, 12 }
  0x33   : > { %s1581_s10 = scalar_select %p47_p10, %s1428_s17, %s49_s6  }
  0x34   : > { %s1587_s22 = scalar_lea.hbm %s1844_s0, %s1041_s11  ;;  %s227_s24 = scalar_lea.vmem [#allocation3], %s1027_s9 }
  0x35   : > { %s235_s28 = sshll.u32 %s227_s24, 4  ;;  %p1593_p13 = pnand %p1240_p12, %p1566_p6  ;;  %s1589_s28 = int_to_ptr.vmem [resolvable:$true] %s235_s28 }
  0x36   : > { %s1597_s6 = scalar_lea.sflag [#allocation4], %s223_s29  ;;  %s1324_s12 = scalar_lea.hbm %s1587_s22, 4096 }
  0x37   : > { %p1325_p0 = scmp.ne.s32.totalorder %s1587_s22, %s1324_s12  ;;  %p1326_p3 = pneg %p1593_p13 }
  0x38   : > { %s1329_s7 = scalar_lea.hbm %s1844_s0, 32768  ;;  %p1330_p9 = scmp.lt.u32.totalorder %s1587_s22, %s1844_s0 }
  0x39   : > { %p1327_p5 = pnand %p1326_p3, %p1325_p0  ;;  %p1331_p1 = scmp.lt.u32.totalorder %s1329_s7, %s1324_s12 }
  0x3a   : > { %p1333_p4 = scmp.lt.u32.totalorder %s1324_s12, %s1587_s22 }
  0x3b   : > { %p1328_p7 = pneg %p1327_p5  ;;  %p1332_p2 = por %p1331_p1, %p1330_p9 }
  0x3d   : > { %p1334_p6 = por %p1333_p4, %p1332_p2 }
  0x3f   : > { %p1335_p8 = pnand %p1334_p6, %p1328_p7 }
  0x41   : > { %1338 = shalt.err (!%p1335_p8)
}
  0x42   : > { %s1339_s29 = scalar_lea.vmem %s1589_s28, 4096  ;;  %s1445_s9 = smov [#allocation3]  }
  0x43   : > { %p1340_p12 = scmp.ne.s32.totalorder %s1589_s28, %s1339_s29  ;;  %s1344_s11 = sshll.u32 %s1445_s9, 4  ;;  %s1345_s11 = int_to_ptr.vmem [resolvable:$false] %s1344_s11 }
  0x44   : > { %s1346_s13 = scalar_lea.vmem %s1345_s11, 8192  ;;  %p1347_p5 = scmp.lt.s32.totalorder %s1589_s28, %s1345_s11 }
  0x45   : > { %p1342_p10 = pnand %p1340_p12, %p1326_p3  ;;  %p1348_p9 = scmp.lt.s32.totalorder %s1346_s13, %s1339_s29 }
  0x47   : > { %p1343_p0 = pneg %p1342_p10  ;;  %p1349_p1 = por %p1348_p9, %p1347_p5 }
  0x49   : > { %p1350_p2 = pnand %p1349_p1, %p1343_p0 }
  0x4b   : > { %1353 = shalt.err (!%p1350_p2)
}
  0x4c   : > { %1234 = dma.hbm_to_vmem [thread:$0]  (!%p1593_p13), %s1587_s22, 4096, %s1589_s28, %s1597_s6, %s1443_s14, %s1443_s14, %s1444_s21  }
  0x4d   : > { %p1863_p3 = scmp.ne.s32.totalorder %s1857_s27, 0 }
  0x4e   : > { %s1631_s12 = sand.u32 (!%p1863_p3), 1, %s1424_s16   ;;  %p1864_p7 = scmp.ne.s32.totalorder (!%p1863_p3), %s1855_s25, 0 }
  0x4f   : > { %247 = sbr.rel (%p1863_p3) target bundleno = 387 (0x183), region = 36  ;;  %s1031_s7 = sshll.u32 (!%p1863_p3), %s1631_s12, 8 }
  0x50   : > { %s250_s24 = scalar_lea.sflag (!%p1863_p3), [#allocation4], %s1631_s12  ;;  %s1637_s8 = scalar_lea.vmem (!%p1863_p3), [#allocation3], %s1031_s7 }
  0x56   : > { %1407 = dma.done.wait (%p1864_p7), %s250_s24, 4096  }
  0x57   : > { %1409 = vsyncadd (%p1864_p7), %s250_s24, 4294963200  ;;  %p1865_p13 = scmp.ne.s32.totalorder %s1853_s23, 0 }
  0x59   : > { %1411 = dma.done.wait (%p1865_p13), [#allocation7], 2048  }
  0x5a   : > { %1413 = vsyncadd (%p1865_p13), [#allocation7], 4294965248  ;;  %v397_v0 = vld [vmem:[#allocation6] sm:$0xff]  ;;  %v398_v1 = vld [vmem:[#allocation6 + $0x8] sm:$0xff]  ;;  %s1703_s21 = scalar_lea.vmem [#allocation8], %s1031_s7  ;;  %s1042_s22 = sshll.u32 %s1432_s18, 12 }
  0x5b   : > { %v399_v2 = vld [vmem:[#allocation6 + $0x10] sm:$0xff]  ;;  %v1171_v3 = vpack.c.bf16 %v398_v1, %v397_v0  ;;  %v400_v4 = vld [vmem:[#allocation6 + $0x18] sm:$0xff]  ;;  %v401_v6 = vld [vmem:[#allocation6 + $0x20] sm:$0xff]  ;;  %s894_s28 = sshll.u32 %s1703_s21, 4  ;;  %s1790_s29 = scalar_lea.hbm %s1848_s4, %s1042_s22  ;;  %s1792_s28 = int_to_ptr.vmem [resolvable:$true] %s894_s28 }
  0x5c   : > { %v1175_v5 = vpack.c.bf16 %v400_v4, %v399_v2  ;;  %v402_v7 = vld [vmem:[#allocation6 + $0x28] sm:$0xff]  ;;  %v365_v9 = vld [vmem:[%s1637_s8] sm:$0xff]  ;;  %v403_v11 = vld [vmem:[#allocation6 + $0x30] sm:$0xff]  ;;  %s880_s9 = scalar_lea.sflag [#allocation5], %s1631_s12  ;;  %s1354_s11 = scalar_lea.vmem %s1792_s28, 4096 }
  0x5d   : > { %1172 = vmatprep.subr.bf16.mxu0 %v1171_v3  ;;  %1203 = vmatprep.subr.bf16.mxu1 %v1171_v3  ;;  %v1179_v8 = vpack.c.bf16 %v402_v7, %v401_v6  ;;  %v381_v10 = vld [vmem:[%s1637_s8 + $0x80] sm:$0xff]  ;;  %v404_v12 = vld [vmem:[#allocation6 + $0x38] sm:$0xff]  ;;  %v406_v15 = vld [vmem:[#allocation6 + $0x48] sm:$0xff]  ;;  %p1355_p4 = scmp.ne.s32.totalorder %s1792_s28, %s1354_s11  ;;  %s1446_s13 = smov [#allocation8]  }
  0x5e   : > { %1174 = vmatpush3.bf16.msra.mxu0 %v1171_v3  ;;  %1211 = vmatpush3.bf16.msra.mxu1 %v1171_v3  ;;  %v1183_v13 = vpack.c.bf16 %v404_v12, %v403_v11  ;;  %v405_v14 = vld [vmem:[#allocation6 + $0x40] sm:$0xff]  ;;  %v407_v17 = vld [vmem:[#allocation6 + $0x50] sm:$0xff]  ;;  %v408_v18 = vld [vmem:[#allocation6 + $0x58] sm:$0xff]  ;;  %s1358_s7 = sshll.u32 %s1446_s13, 4  ;;  %s1359_s7 = int_to_ptr.vmem [resolvable:$false] %s1358_s7 }
  0x5f   : > { %1176 = vmatprep.subr.bf16.mxu0 %v1175_v5  ;;  %1204 = vmatprep.subr.bf16.mxu1 %v1175_v5  ;;  %v1187_v16 = vpack.c.bf16 %v406_v15, %v405_v14  ;;  %v1191_v19 = vpack.c.bf16 %v408_v18, %v407_v17  ;;  %v409_v20 = vld [vmem:[#allocation6 + $0x60] sm:$0xff]  ;;  %v410_v21 = vld [vmem:[#allocation6 + $0x68] sm:$0xff]  ;;  %v411_v23 = vld [vmem:[#allocation6 + $0x70] sm:$0xff]  ;;  %p1356_p6 = pnand %p1355_p4, %p1572_p11  ;;  %s1360_s24 = scalar_lea.vmem %s1359_s7, 8192 }
  0x60   : > { %1123 = vmatprep.mubr.f32.mxu0 %v365_v9  ;;  %1147 = vmatprep.mubr.f32.mxu1 %v381_v10  ;;  %v1195_v22 = vpack.c.bf16 %v410_v21, %v409_v20  ;;  %v412_v24 = vld [vmem:[#allocation6 + $0x78] sm:$0xff]  ;;  %v366_v26 = vld [vmem:[%s1637_s8 + $0x8] sm:$0xff]  ;;  %v367_v28 = vld [vmem:[%s1637_s8 + $0x10] sm:$0xff]  ;;  %p1361_p12 = scmp.lt.s32.totalorder %s1792_s28, %s1359_s7  ;;  %p1362_p10 = scmp.lt.s32.totalorder %s1360_s24, %s1354_s11 }
  0x61   : > { %v1199_v25 = vpack.c.bf16 %v412_v24, %v411_v23  ;;  %v382_v27 = vld [vmem:[%s1637_s8 + $0x88] sm:$0xff]  ;;  %v383_v29 = vld [vmem:[%s1637_s8 + $0x90] sm:$0xff]  ;;  %v368_v30 = vld [vmem:[%s1637_s8 + $0x18] sm:$0xff]  ;;  %p1357_p8 = pneg %p1356_p6 }
  0x62   : > { %1178 = vmatpush3.bf16.msra.mxu0 %v1175_v5  ;;  %1212 = vmatpush3.bf16.msra.mxu1 %v1175_v5  ;;  %v384_v31 = vld [vmem:[%s1637_s8 + $0x98] sm:$0xff]  ;;  %v369_v32 = vld [vmem:[%s1637_s8 + $0x20] sm:$0xff]  ;;  %v370_v34 = vld [vmem:[%s1637_s8 + $0x28] sm:$0xff]  ;;  %p1363_p0 = por %p1362_p10, %p1361_p12 }
  0x63   : > { %1180 = vmatprep.subr.bf16.mxu0 %v1179_v8  ;;  %1205 = vmatprep.subr.bf16.mxu1 %v1179_v8  ;;  %v385_v33 = vld [vmem:[%s1637_s8 + $0xa0] sm:$0xff]  ;;  %v386_v35 = vld [vmem:[%s1637_s8 + $0xa8] sm:$0xff]  ;;  %v371_v36 = vld [vmem:[%s1637_s8 + $0x30] sm:$0xff] }
  0x64   : > { %v387_v37 = vld [vmem:[%s1637_s8 + $0xb0] sm:$0xff]  ;;  %v372_v38 = vld [vmem:[%s1637_s8 + $0x38] sm:$0xff]  ;;  %v373_v40 = vld [vmem:[%s1637_s8 + $0x40] sm:$0xff]  ;;  %p1364_p5 = pnand %p1363_p0, %p1357_p8 }
  0x65   : > { %v388_v39 = vld [vmem:[%s1637_s8 + $0xb8] sm:$0xff]  ;;  %v389_v41 = vld [vmem:[%s1637_s8 + $0xc0] sm:$0xff]  ;;  %v374_v42 = vld [vmem:[%s1637_s8 + $0x48] sm:$0xff] }
  0x66   : > { %1182 = vmatpush3.bf16.msra.mxu0 %v1179_v8  ;;  %1213 = vmatpush3.bf16.msra.mxu1 %v1179_v8  ;;  %v390_v43 = vld [vmem:[%s1637_s8 + $0xc8] sm:$0xff]  ;;  %v375_v44 = vld [vmem:[%s1637_s8 + $0x50] sm:$0xff]  ;;  %v376_v46 = vld [vmem:[%s1637_s8 + $0x58] sm:$0xff] }
  0x67   : > { %1184 = vmatprep.subr.bf16.mxu0 %v1183_v13  ;;  %1206 = vmatprep.subr.bf16.mxu1 %v1183_v13  ;;  %v391_v45 = vld [vmem:[%s1637_s8 + $0xd0] sm:$0xff]  ;;  %v392_v47 = vld [vmem:[%s1637_s8 + $0xd8] sm:$0xff]  ;;  %v377_v48 = vld [vmem:[%s1637_s8 + $0x60] sm:$0xff] }
  0x68   : > { %v393_v49 = vld [vmem:[%s1637_s8 + $0xe0] sm:$0xff]  ;;  %v378_v50 = vld [vmem:[%s1637_s8 + $0x68] sm:$0xff]  ;;  %v379_v52 = vld [vmem:[%s1637_s8 + $0x70] sm:$0xff] }
  0x69   : > { %v394_v51 = vld [vmem:[%s1637_s8 + $0xe8] sm:$0xff]  ;;  %v395_v53 = vld [vmem:[%s1637_s8 + $0xf0] sm:$0xff]  ;;  %v380_v54 = vld [vmem:[%s1637_s8 + $0x78] sm:$0xff] }
  0x6a   : > { %1186 = vmatpush3.bf16.msra.mxu0 %v1183_v13  ;;  %1214 = vmatpush3.bf16.msra.mxu1 %v1183_v13  ;;  %v396_v55 = vld [vmem:[%s1637_s8 + $0xf8] sm:$0xff]  ;;  %v1682_v56 = vld [vmem:[%s1846_s2] ss:$0 sm:$0xff] }
  0x6b   : > { %1188 = vmatprep.subr.bf16.mxu0 %v1187_v16  ;;  %1207 = vmatprep.subr.bf16.mxu1 %v1187_v16  ;;  %v1687_v58 = vld [vmem:[%s1847_s3] ss:$0 sm:$0xff] }
  0x6e   : > { %1190 = vmatpush3.bf16.msra.mxu0 %v1187_v16  ;;  %1215 = vmatpush3.bf16.msra.mxu1 %v1187_v16 }
  0x6f   : > { %1192 = vmatprep.subr.bf16.mxu0 %v1191_v19  ;;  %1208 = vmatprep.subr.bf16.mxu1 %v1191_v19 }
  0x72   : > { %1194 = vmatpush3.bf16.msra.mxu0 %v1191_v19  ;;  %1216 = vmatpush3.bf16.msra.mxu1 %v1191_v19 }
  0x73   : > { %1196 = vmatprep.subr.bf16.mxu0 %v1195_v22  ;;  %1209 = vmatprep.subr.bf16.mxu1 %v1195_v22 }
  0x76   : > { %1198 = vmatpush3.bf16.msra.mxu0 %v1195_v22  ;;  %1217 = vmatpush3.bf16.msra.mxu1 %v1195_v22 }
  0x77   : > { %1200 = vmatprep.subr.bf16.mxu0 %v1199_v25  ;;  %1210 = vmatprep.subr.bf16.mxu1 %v1199_v25 }
  0x7a   : > { %1202 = vmatpush3.bf16.msra.mxu0 %v1199_v25  ;;  %1218 = vmatpush3.bf16.msra.mxu1 %v1199_v25 }
  0x7d   : > { %1124 = vmatmul.mubr.f32.vlgmr.msra.gmra.mrb[0].mxu0 %v366_v26  ;;  %1148 = vmatmul.mubr.f32.vlgmr.msra.gmra.mrb[0].mxu1 %v382_v27 }
  0x7e   : > { %1126 = vmatprep.mubr.f32.mxu0 %v367_v28  ;;  %1150 = vmatprep.mubr.f32.mxu1 %v383_v29 }
  0x81   : > { %1127 = vmatmul.mubr.f32.gmra.mrb[2].mxu0 %v368_v30  ;;  %1151 = vmatmul.mubr.f32.gmra.mrb[2].mxu1 %v384_v31 }
  0x82   : > { %1129 = vmatprep.mubr.f32.mxu0 %v369_v32  ;;  %1153 = vmatprep.mubr.f32.mxu1 %v385_v33 }
  0x85   : > { %1130 = vmatmul.mubr.f32.gmra.mrb[4].mxu0 %v370_v34  ;;  %1154 = vmatmul.mubr.f32.gmra.mrb[4].mxu1 %v386_v35 }
  0x86   : > { %1132 = vmatprep.mubr.f32.mxu0 %v371_v36  ;;  %1156 = vmatprep.mubr.f32.mxu1 %v387_v37 }
  0x89   : > { %1133 = vmatmul.mubr.f32.gmra.mrb[6].mxu0 %v372_v38  ;;  %1157 = vmatmul.mubr.f32.gmra.mrb[6].mxu1 %v388_v39 }
  0x8a   : > { %1135 = vmatprep.mubr.f32.mxu0 %v373_v40  ;;  %1159 = vmatprep.mubr.f32.mxu1 %v389_v41 }
  0x8d   : > { %1136 = vmatmul.mubr.f32.gmra.mrb[8].mxu0 %v374_v42  ;;  %1160 = vmatmul.mubr.f32.gmra.mrb[8].mxu1 %v390_v43 }
  0x8e   : > { %1138 = vmatprep.mubr.f32.mxu0 %v375_v44  ;;  %1162 = vmatprep.mubr.f32.mxu1 %v391_v45 }
  0x91   : > { %1139 = vmatmul.mubr.f32.gmra.mrb[10].mxu0 %v376_v46  ;;  %1163 = vmatmul.mubr.f32.gmra.mrb[10].mxu1 %v392_v47 }
  0x92   : > { %1141 = vmatprep.mubr.f32.mxu0 %v377_v48  ;;  %1165 = vmatprep.mubr.f32.mxu1 %v393_v49 }
  0x95   : > { %1142 = vmatmul.mubr.f32.gmra.mrb[12].mxu0 %v378_v50  ;;  %1166 = vmatmul.mubr.f32.gmra.mrb[12].mxu1 %v394_v51 }
  0x96   : > { %1144 = vmatprep.mubr.f32.mxu0 %v379_v52  ;;  %1168 = vmatprep.mubr.f32.mxu1 %v395_v53 }
  0x99   : > { %1145 = vmatmul.mubr.f32.gmra.mrb[14].mxu0 %v380_v54  ;;  %1169 = vmatmul.mubr.f32.gmra.mrb[14].mxu1 %v396_v55 }
 0x150   : > { %v1125_v57 = vpop.f32.mrb[0].mxu0  ;;  %v1149_v59 = vpop.f32.mrb[0].mxu1 }
 0x151   : > { %v745_v60 = vmul.f32 %v1125_v57, %v1682_v56  ;;  %v761_v61 = vmul.f32 %v1149_v59, %v1682_v56  ;;  %v479_v62 = vpop.f32.mrb[1].mxu0  ;;  %v559_v63 = vpop.f32.mrb[1].mxu1 }
 0x152   : > { %v744_v0 = vmul.f32 %v1682_v56, %v479_v62  ;;  %v760_v1 = vmul.f32 %v1682_v56, %v559_v63 }
 0x153   : > { %v784_v2 = vadd.f32 %v1687_v58, %v745_v60  ;;  %v800_v3 = vadd.f32 %v1687_v58, %v761_v61 }
 0x154   : > { %v783_v4 = vadd.f32 %v1687_v58, %v744_v0  ;;  %v799_v5 = vadd.f32 %v1687_v58, %v760_v1  ;;  %v1128_v6 = vpop.f32.mrb[2].mxu0  ;;  %v1152_v7 = vpop.f32.mrb[2].mxu1 }
 0x155   : > { %v816_v8 = vmax.f32 %v784_v2, 0.0  ;;  %v832_v9 = vmax.f32 %v800_v3, 0.0  ;;  %v747_v10 = vmul.f32 %v1128_v6, %v1682_v56  ;;  %v763_v11 = vmul.f32 %v1152_v7, %v1682_v56  ;;  %v489_v12 = vpop.f32.mrb[3].mxu0  ;;  %v569_v13 = vpop.f32.mrb[3].mxu1 }
 0x156   : > { %v815_v14 = vmax.f32 %v783_v4, 0.0  ;;  %v831_v15 = vmax.f32 %v799_v5, 0.0  ;;  %v746_v16 = vmul.f32 %v1682_v56, %v489_v12  ;;  %v762_v17 = vmul.f32 %v1682_v56, %v569_v13 }
 0x157   : > { %848 = vst [vmem:[%s1703_s21 + $0x8] sm:$0xff] %v816_v8  ;;  %864 = vst [vmem:[%s1703_s21 + $0x88] sm:$0xff] %v832_v9  ;;  %v786_v18 = vadd.f32 %v1687_v58, %v747_v10  ;;  %v802_v19 = vadd.f32 %v1687_v58, %v763_v11 }
 0x158   : > { %847 = vst [vmem:[%s1703_s21] sm:$0xff] %v815_v14  ;;  %863 = vst [vmem:[%s1703_s21 + $0x80] sm:$0xff] %v831_v15  ;;  %v785_v20 = vadd.f32 %v1687_v58, %v746_v16  ;;  %v801_v21 = vadd.f32 %v1687_v58, %v762_v17  ;;  %v1131_v22 = vpop.f32.mrb[4].mxu0  ;;  %v1155_v23 = vpop.f32.mrb[4].mxu1 }
 0x159   : > { %v818_v24 = vmax.f32 %v786_v18, 0.0  ;;  %v834_v25 = vmax.f32 %v802_v19, 0.0  ;;  %v749_v26 = vmul.f32 %v1131_v22, %v1682_v56  ;;  %v765_v27 = vmul.f32 %v1155_v23, %v1682_v56  ;;  %v499_v28 = vpop.f32.mrb[5].mxu0  ;;  %v579_v29 = vpop.f32.mrb[5].mxu1 }
 0x15a   : > { %v817_v30 = vmax.f32 %v785_v20, 0.0  ;;  %v833_v31 = vmax.f32 %v801_v21, 0.0  ;;  %v748_v32 = vmul.f32 %v1682_v56, %v499_v28  ;;  %v764_v33 = vmul.f32 %v1682_v56, %v579_v29 }
 0x15b   : > { %850 = vst [vmem:[%s1703_s21 + $0x18] sm:$0xff] %v818_v24  ;;  %866 = vst [vmem:[%s1703_s21 + $0x98] sm:$0xff] %v834_v25  ;;  %v788_v34 = vadd.f32 %v1687_v58, %v749_v26  ;;  %v804_v35 = vadd.f32 %v1687_v58, %v765_v27 }
 0x15c   : > { %849 = vst [vmem:[%s1703_s21 + $0x10] sm:$0xff] %v817_v30  ;;  %865 = vst [vmem:[%s1703_s21 + $0x90] sm:$0xff] %v833_v31  ;;  %v787_v36 = vadd.f32 %v1687_v58, %v748_v32  ;;  %v803_v37 = vadd.f32 %v1687_v58, %v764_v33  ;;  %v1134_v38 = vpop.f32.mrb[6].mxu0  ;;  %v1158_v39 = vpop.f32.mrb[6].mxu1 }
 0x15d   : > { %v820_v40 = vmax.f32 %v788_v34, 0.0  ;;  %v836_v41 = vmax.f32 %v804_v35, 0.0  ;;  %v751_v42 = vmul.f32 %v1134_v38, %v1682_v56  ;;  %v767_v43 = vmul.f32 %v1158_v39, %v1682_v56  ;;  %v509_v44 = vpop.f32.mrb[7].mxu0  ;;  %v589_v45 = vpop.f32.mrb[7].mxu1 }
 0x15e   : > { %v819_v46 = vmax.f32 %v787_v36, 0.0  ;;  %v835_v47 = vmax.f32 %v803_v37, 0.0  ;;  %v750_v48 = vmul.f32 %v1682_v56, %v509_v44  ;;  %v766_v49 = vmul.f32 %v1682_v56, %v589_v45 }
 0x15f   : > { %852 = vst [vmem:[%s1703_s21 + $0x28] sm:$0xff] %v820_v40  ;;  %868 = vst [vmem:[%s1703_s21 + $0xa8] sm:$0xff] %v836_v41  ;;  %v790_v50 = vadd.f32 %v1687_v58, %v751_v42  ;;  %v806_v51 = vadd.f32 %v1687_v58, %v767_v43 }
 0x160   : > { %851 = vst [vmem:[%s1703_s21 + $0x20] sm:$0xff] %v819_v46  ;;  %867 = vst [vmem:[%s1703_s21 + $0xa0] sm:$0xff] %v835_v47  ;;  %v789_v52 = vadd.f32 %v1687_v58, %v750_v48  ;;  %v805_v53 = vadd.f32 %v1687_v58, %v766_v49  ;;  %v1137_v54 = vpop.f32.mrb[8].mxu0  ;;  %v1161_v55 = vpop.f32.mrb[8].mxu1 }
 0x161   : > { %v822_v57 = vmax.f32 %v790_v50, 0.0  ;;  %v838_v59 = vmax.f32 %v806_v51, 0.0  ;;  %v753_v60 = vmul.f32 %v1137_v54, %v1682_v56  ;;  %v769_v61 = vmul.f32 %v1161_v55, %v1682_v56  ;;  %v519_v62 = vpop.f32.mrb[9].mxu0  ;;  %v599_v63 = vpop.f32.mrb[9].mxu1 }
 0x162   : > { %v821_v0 = vmax.f32 %v789_v52, 0.0  ;;  %v837_v1 = vmax.f32 %v805_v53, 0.0  ;;  %v752_v2 = vmul.f32 %v1682_v56, %v519_v62  ;;  %v768_v3 = vmul.f32 %v1682_v56, %v599_v63 }
 0x163   : > { %854 = vst [vmem:[%s1703_s21 + $0x38] sm:$0xff] %v822_v57  ;;  %870 = vst [vmem:[%s1703_s21 + $0xb8] sm:$0xff] %v838_v59  ;;  %v792_v4 = vadd.f32 %v1687_v58, %v753_v60  ;;  %v808_v5 = vadd.f32 %v1687_v58, %v769_v61 }
 0x164   : > { %853 = vst [vmem:[%s1703_s21 + $0x30] sm:$0xff] %v821_v0  ;;  %869 = vst [vmem:[%s1703_s21 + $0xb0] sm:$0xff] %v837_v1  ;;  %v791_v6 = vadd.f32 %v1687_v58, %v752_v2  ;;  %v807_v7 = vadd.f32 %v1687_v58, %v768_v3  ;;  %v1140_v8 = vpop.f32.mrb[10].mxu0  ;;  %v1164_v9 = vpop.f32.mrb[10].mxu1 }
 0x165   : > { %v824_v10 = vmax.f32 %v792_v4, 0.0  ;;  %v840_v11 = vmax.f32 %v808_v5, 0.0  ;;  %v755_v12 = vmul.f32 %v1140_v8, %v1682_v56  ;;  %v771_v13 = vmul.f32 %v1164_v9, %v1682_v56  ;;  %v529_v14 = vpop.f32.mrb[11].mxu0  ;;  %v609_v15 = vpop.f32.mrb[11].mxu1 }
 0x166   : > { %v823_v16 = vmax.f32 %v791_v6, 0.0  ;;  %v839_v17 = vmax.f32 %v807_v7, 0.0  ;;  %v754_v18 = vmul.f32 %v1682_v56, %v529_v14  ;;  %v770_v19 = vmul.f32 %v1682_v56, %v609_v15 }
 0x167   : > { %856 = vst [vmem:[%s1703_s21 + $0x48] sm:$0xff] %v824_v10  ;;  %872 = vst [vmem:[%s1703_s21 + $0xc8] sm:$0xff] %v840_v11  ;;  %v794_v20 = vadd.f32 %v1687_v58, %v755_v12  ;;  %v810_v21 = vadd.f32 %v1687_v58, %v771_v13 }
 0x168   : > { %855 = vst [vmem:[%s1703_s21 + $0x40] sm:$0xff] %v823_v16  ;;  %871 = vst [vmem:[%s1703_s21 + $0xc0] sm:$0xff] %v839_v17  ;;  %v793_v22 = vadd.f32 %v1687_v58, %v754_v18  ;;  %v809_v23 = vadd.f32 %v1687_v58, %v770_v19  ;;  %v1143_v24 = vpop.f32.mrb[12].mxu0  ;;  %v1167_v25 = vpop.f32.mrb[12].mxu1 }
 0x169   : > { %v826_v26 = vmax.f32 %v794_v20, 0.0  ;;  %v842_v27 = vmax.f32 %v810_v21, 0.0  ;;  %v757_v28 = vmul.f32 %v1143_v24, %v1682_v56  ;;  %v773_v29 = vmul.f32 %v1167_v25, %v1682_v56  ;;  %v539_v30 = vpop.f32.mrb[13].mxu0  ;;  %v619_v31 = vpop.f32.mrb[13].mxu1 }
 0x16a   : > { %v825_v32 = vmax.f32 %v793_v22, 0.0  ;;  %v841_v33 = vmax.f32 %v809_v23, 0.0  ;;  %v756_v34 = vmul.f32 %v1682_v56, %v539_v30  ;;  %v772_v35 = vmul.f32 %v1682_v56, %v619_v31 }
 0x16b   : > { %858 = vst [vmem:[%s1703_s21 + $0x58] sm:$0xff] %v826_v26  ;;  %874 = vst [vmem:[%s1703_s21 + $0xd8] sm:$0xff] %v842_v27  ;;  %v796_v36 = vadd.f32 %v1687_v58, %v757_v28  ;;  %v812_v37 = vadd.f32 %v1687_v58, %v773_v29 }
 0x16c   : > { %857 = vst [vmem:[%s1703_s21 + $0x50] sm:$0xff] %v825_v32  ;;  %873 = vst [vmem:[%s1703_s21 + $0xd0] sm:$0xff] %v841_v33  ;;  %v795_v38 = vadd.f32 %v1687_v58, %v756_v34  ;;  %v811_v39 = vadd.f32 %v1687_v58, %v772_v35  ;;  %v1146_v40 = vpop.f32.mrb[14].mxu0  ;;  %v1170_v41 = vpop.f32.mrb[14].mxu1 }
 0x16d   : > { %v828_v42 = vmax.f32 %v796_v36, 0.0  ;;  %v844_v43 = vmax.f32 %v812_v37, 0.0  ;;  %v759_v44 = vmul.f32 %v1146_v40, %v1682_v56  ;;  %v775_v45 = vmul.f32 %v1170_v41, %v1682_v56  ;;  %v549_v46 = vpop.f32.mrb[15].mxu0  ;;  %v629_v47 = vpop.f32.mrb[15].mxu1 }
 0x16e   : > { %v827_v48 = vmax.f32 %v795_v38, 0.0  ;;  %v843_v49 = vmax.f32 %v811_v39, 0.0  ;;  %v758_v50 = vmul.f32 %v1682_v56, %v549_v46  ;;  %v774_v51 = vmul.f32 %v1682_v56, %v629_v47 }
 0x16f   : > { %860 = vst [vmem:[%s1703_s21 + $0x68] sm:$0xff] %v828_v42  ;;  %876 = vst [vmem:[%s1703_s21 + $0xe8] sm:$0xff] %v844_v43  ;;  %v798_v52 = vadd.f32 %v1687_v58, %v759_v44  ;;  %v814_v53 = vadd.f32 %v1687_v58, %v775_v45 }
 0x170   : > { %859 = vst [vmem:[%s1703_s21 + $0x60] sm:$0xff] %v827_v48  ;;  %875 = vst [vmem:[%s1703_s21 + $0xe0] sm:$0xff] %v843_v49  ;;  %v797_v54 = vadd.f32 %v1687_v58, %v758_v50  ;;  %v813_v56 = vadd.f32 %v1687_v58, %v774_v51 }
 0x171   : > { %v830_v55 = vmax.f32 %v798_v52, 0.0  ;;  %v846_v57 = vmax.f32 %v814_v53, 0.0 }
 0x172   : > { %v829_v59 = vmax.f32 %v797_v54, 0.0  ;;  %v845_v60 = vmax.f32 %v813_v56, 0.0 }
 0x173   : > { %862 = vst [vmem:[%s1703_s21 + $0x78] sm:$0xff] %v830_v55  ;;  %878 = vst [vmem:[%s1703_s21 + $0xf8] sm:$0xff] %v846_v57 }
 0x174   : > { %861 = vst [vmem:[%s1703_s21 + $0x70] sm:$0xff] %v829_v59  ;;  %877 = vst [vmem:[%s1703_s21 + $0xf0] sm:$0xff] %v845_v60 }
 0x175   : > { %1367 = shalt.err (!%p1364_p5)
}
 0x176   : > { %s1368_s8 = scalar_lea.hbm %s1790_s29, 4096  ;;  %s1372_s27 = scalar_lea.hbm %s1848_s4, 32768 }
 0x177   : > { %p1369_p9 = scmp.ne.s32.totalorder %s1790_s29, %s1368_s8  ;;  %p1373_p3 = scmp.lt.u32.totalorder %s1790_s29, %s1848_s4 }
 0x178   : > { %p1374_p7 = scmp.lt.u32.totalorder %s1372_s27, %s1368_s8  ;;  %p1376_p4 = scmp.lt.u32.totalorder %s1368_s8, %s1790_s29 }
 0x179   : > { %p1370_p1 = pnand %p1369_p9, %p1572_p11 }
 0x17a   : > { %p1375_p13 = por %p1374_p7, %p1373_p3 }
 0x17b   : > { %p1371_p2 = pneg %p1370_p1 }
 0x17c   : > { %p1377_p6 = por %p1376_p4, %p1375_p13 }
 0x17e   : > { %p1378_p8 = pnand %p1377_p6, %p1371_p2 }
 0x180   : > { %1381 = shalt.err (!%p1378_p8)
}
 0x181   : > { %s1447_s22 = smov 128   ;;  %s1448_s18 = smov 8  }
 0x182   : > { %1225 = dma.vmem_to_hbm [thread:$0]  (%p1572_p11), %s1792_s28, 4096, %s1790_s29, %s880_s9, %s1447_s22, %s1447_s22, %s1448_s18  }
 0x183 PF: > { %p1242_p12 = scmp.ge.s32.totalorder %s1440_s20, 2  ;;  %s909_s6 = sand.u32 1, %s1420_s15  }
 0x184   : > { %p1866_p10 = scmp.ne.s32.totalorder %s1856_s26, 0  ;;  %s910_s11 = scalar_lea.sflag [#allocation5], %s909_s6 }
 0x186   : > { %p1236_p0 = pnand %p1242_p12, %p1866_p10 }
 0x188   : > { %1415 = dma.done.wait (!%p1236_p0), %s910_s11, 4096  }
 0x189   : > { %1417 = vsyncadd (!%p1236_p0), %s910_s11, 4294963200  ;;  %s21_s20 = sadd.s32 1, %s1440_s20   ;;  %s1867_s15 = smov %s1424_s16 }
 0x18a   : > { %p18_p5 = scmp.ge.s32.totalorder %s21_s20, 10   ;;  %s1868_s16 = smov %s1428_s17 }
 0x18b   : > { %s1869_s17 = smov %s1581_s10  ;;  %s1870_s18 = smov %s1436_s19 }
 0x18c   : > { %s1871_s19 = smov %s1873_s5  ;;  %20 = sbr.rel (!%p18_p5) target bundleno = 7 (0x7), region = 100 }
 0x193   :  { %915 = vsyncpa [#allocation4], 1 }
 0x194   :  { %917 = vsyncpa [#allocation4 + $0x1], 1 }
 0x195   :  { %918 = vsyncpa [#allocation7], 1 }
 0x196   :  { %919 = vsyncpa [#allocation5], 1 }
 0x197   :  { %921 = vsyncpa [#allocation5 + $0x1], 1 }

</bundles_post_ra>
